<compile_context>
chip_gen: v5e
topology: v5e:2x2
jax: 0.10.0
libtpu: 0.0.40
codegen_flags: <defaults>
</compile_context>

<pallas_src>
import jax
import jax.numpy as jnp
from jax import lax
from jax.experimental import pallas as pl
from jax.experimental.pallas import tpu as pltpu


_GOLDEN = 0x9E3779B9            # second-stream seed perturbation
_TWO_PI = 6.283185307179586


def _round_up(x, m):
    return ((x + m - 1) // m) * m


def _hash_u32(x, seed):
    """lowbias32-style integer hash: stateless, pure VPU bit ops."""
    x = x ^ seed
    x = x ^ (x >> jnp.uint32(16))
    x = x * jnp.uint32(0x7FEB352D)
    x = x ^ (x >> jnp.uint32(15))
    x = x * jnp.uint32(0x846CA68B)
    x = x ^ (x >> jnp.uint32(16))
    return x


def _bits_to_uniform(bits):
    """uint32 bits -> float32 uniform in [0, 1) via the exponent trick."""
    mant = (bits >> jnp.uint32(9)) | jnp.uint32(0x3F800000)   # [1, 2)
    return lax.bitcast_convert_type(mant, jnp.float32) - 1.0  # [0, 1)


def fake_attention_kernel(seed_ref, out_ref):
    tile_b, width = out_ref.shape
    half = width // 2                      # multiple of 128 by construction

    seed = seed_ref[0].astype(jnp.uint32)
    row0 = pl.program_id(0) * tile_b       # global first row -> grid-invariant draws

    rows = lax.broadcasted_iota(jnp.int32, (tile_b, half), 0) + row0
    cols = lax.broadcasted_iota(jnp.int32, (tile_b, half), 1)
    ctr = rows.astype(jnp.uint32) * jnp.uint32(half) + cols.astype(jnp.uint32)

    u1 = _bits_to_uniform(_hash_u32(ctr, seed))
    u2 = _bits_to_uniform(_hash_u32(ctr, seed ^ jnp.uint32(_GOLDEN)))

    # Box-Muller, both branches: (r*cos, r*sin) are two i.i.d. N(0,1) samples.
    r = jnp.sqrt(-2.0 * jnp.log(1.0 - u1))          # 1 - u1 in (0, 1] -> log finite
    theta = jnp.float32(_TWO_PI) * u2
    out_ref[:, :half] = r * jnp.cos(theta)          # full, unmasked lane-dense stores
    out_ref[:, half:] = r * jnp.sin(theta)


def fake_attention(listener_state, listener_len, speller_state, batch_size,
                   attention_size=128, seed=0, batch_first=False):
    """JAX/Pallas equivalent of FakeAttention.forward.

    listener_state / listener_len / speller_state / batch_first are accepted for
    signature parity but unused — exactly like the reference module.
    """
    del listener_state, listener_len, speller_state, batch_first  # unused (matches reference)

    batch_size = int(batch_size)
    a_pad = _round_up(attention_size, 128)          # lane-dense context section
    width = _round_up(a_pad + 128, 256)             # + padded score section; half stays 128-aligned
    b_pad = _round_up(max(batch_size, 1), 8)        # full 8-sublane stores
    tile_b = min(256, b_pad)                        # small per-step VMEM footprint (v7x safe)
    b_total = _round_up(b_pad, tile_b)
    grid = (b_total // tile_b,)

    seed_arr = jnp.asarray([seed], dtype=jnp.int32)

    slab = pl.pallas_call(
        fake_attention_kernel,
        out_shape=jax.ShapeDtypeStruct((b_total, width), jnp.float32),
        grid=grid,
        in_specs=[pl.BlockSpec(memory_space=pltpu.MemorySpace.SMEM)],
        out_specs=pl.BlockSpec((tile_b, width), lambda i: (i, 0)),
        compiler_params=pltpu.CompilerParams(
            dimension_semantics=("parallel",)),      # shards batch across v7x's 2 TCs
    )(seed_arr)

    context = slab[:batch_size, :attention_size]
    score = slab[:batch_size, a_pad:a_pad + 10]
    return context, score


if __name__ == "__main__":
    key = jax.random.PRNGKey(0)
    k1, k2 = jax.random.split(key)

    # Small shapes consistent with the module's docstring:
    #   listener_state : Time x Batch x length, listener_len : Batch, speller_state : State_size
    batch_size = 2
    time_steps = 8
    listener_feat = 32
    speller_size = 256
    attention_size = 128

    listener_state = jax.random.normal(
        k1, (time_steps, batch_size, listener_feat), dtype=jnp.float32)
    listener_len = jnp.full((batch_size,), time_steps, dtype=jnp.int32)
    speller_state = jax.random.normal(
        k2, (batch_size, speller_size), dtype=jnp.float32)

    context, score = fake_attention(
        listener_state, listener_len, speller_state, batch_size,
        attention_size=attention_size, seed=0,
    )
    jax.block_until_ready((context, score))

    assert context.shape == (batch_size, attention_size), context.shape
    assert score.shape == (batch_size, 10), score.shape
    assert context.dtype == jnp.float32 and score.dtype == jnp.float32
    assert bool(jnp.all(jnp.isfinite(context))) and bool(jnp.all(jnp.isfinite(score)))

    print("KERNEL_OK")
</pallas_src>

<mosaic_0001>
module attributes {stable_mosaic.version = 11 : i64} {
  func.func @fake_attention_kernel(%arg0: i32, %arg1: memref<1xi32, #tpu.memory_space<smem>>, %arg2: memref<8x256xf32, #tpu.memory_space<vmem>>) attributes {dimension_semantics = [#tpu.dimension_semantics<parallel>], iteration_bounds = array<i64: 1>, scalar_prefetch = 0 : i64, scratch_operands = 0 : i64, tpu.core_type = #tpu.core_type<tc>, window_params = [{transform_indices = @transform_0, window_bounds = array<i64: 1>}, {transform_indices = @transform_1, window_bounds = array<i64: 8, 256>}]} {
    %c0 = arith.constant 0 : index
    %0 = memref.load %arg1[%c0] : memref<1xi32, #tpu.memory_space<smem>>
    %c8_i32 = arith.constant 8 : i32
    %1 = arith.muli %arg0, %c8_i32 : i32
    %2 = tpu.iota {dimensions = array<i32: 0>} : vector<8x128xi32>
    %3 = vector.broadcast %1 : i32 to vector<8x128xi32>
    %4 = arith.addi %2, %3 : vector<8x128xi32>
    %5 = tpu.iota {dimensions = array<i32: 1>} : vector<8x128xi32>
    %c128_i32 = arith.constant 128 : i32
    %6 = vector.broadcast %c128_i32 : i32 to vector<8x128xi32>
    %7 = arith.muli %4, %6 : vector<8x128xi32>
    %8 = arith.addi %7, %5 : vector<8x128xi32>
    %9 = vector.broadcast %0 : i32 to vector<8x128xi32>
    %10 = arith.xori %8, %9 : vector<8x128xi32>
    %c16_i32 = arith.constant 16 : i32
    %11 = vector.broadcast %c16_i32 : i32 to vector<8x128xi32>
    %12 = arith.shrui %10, %11 : vector<8x128xi32>
    %13 = arith.xori %10, %12 : vector<8x128xi32>
    %c2146121005_i32 = arith.constant 2146121005 : i32
    %14 = vector.broadcast %c2146121005_i32 : i32 to vector<8x128xi32>
    %15 = arith.muli %13, %14 : vector<8x128xi32>
    %c15_i32 = arith.constant 15 : i32
    %16 = vector.broadcast %c15_i32 : i32 to vector<8x128xi32>
    %17 = arith.shrui %15, %16 : vector<8x128xi32>
    %18 = arith.xori %15, %17 : vector<8x128xi32>
    %c-2073254261_i32 = arith.constant -2073254261 : i32
    %19 = vector.broadcast %c-2073254261_i32 : i32 to vector<8x128xi32>
    %20 = arith.muli %18, %19 : vector<8x128xi32>
    %c16_i32_0 = arith.constant 16 : i32
    %21 = vector.broadcast %c16_i32_0 : i32 to vector<8x128xi32>
    %22 = arith.shrui %20, %21 : vector<8x128xi32>
    %23 = arith.xori %20, %22 : vector<8x128xi32>
    %c9_i32 = arith.constant 9 : i32
    %24 = vector.broadcast %c9_i32 : i32 to vector<8x128xi32>
    %25 = arith.shrui %23, %24 : vector<8x128xi32>
    %c1065353216_i32 = arith.constant 1065353216 : i32
    %26 = vector.broadcast %c1065353216_i32 : i32 to vector<8x128xi32>
    %27 = arith.ori %25, %26 : vector<8x128xi32>
    %28 = tpu.bitcast %27 : vector<8x128xi32> -> vector<8x128xf32>
    %cst = arith.constant 1.000000e+00 : f32
    %29 = vector.broadcast %cst : f32 to vector<8x128xf32>
    %30 = arith.subf %28, %29 : vector<8x128xf32>
    %c-1640531527_i32 = arith.constant -1640531527 : i32
    %31 = arith.xori %0, %c-1640531527_i32 : i32
    %32 = vector.broadcast %31 : i32 to vector<8x128xi32>
    %33 = arith.xori %8, %32 : vector<8x128xi32>
    %c16_i32_1 = arith.constant 16 : i32
    %34 = vector.broadcast %c16_i32_1 : i32 to vector<8x128xi32>
    %35 = arith.shrui %33, %34 : vector<8x128xi32>
    %36 = arith.xori %33, %35 : vector<8x128xi32>
    %c2146121005_i32_2 = arith.constant 2146121005 : i32
    %37 = vector.broadcast %c2146121005_i32_2 : i32 to vector<8x128xi32>
    %38 = arith.muli %36, %37 : vector<8x128xi32>
    %c15_i32_3 = arith.constant 15 : i32
    %39 = vector.broadcast %c15_i32_3 : i32 to vector<8x128xi32>
    %40 = arith.shrui %38, %39 : vector<8x128xi32>
    %41 = arith.xori %38, %40 : vector<8x128xi32>
    %c-2073254261_i32_4 = arith.constant -2073254261 : i32
    %42 = vector.broadcast %c-2073254261_i32_4 : i32 to vector<8x128xi32>
    %43 = arith.muli %41, %42 : vector<8x128xi32>
    %c16_i32_5 = arith.constant 16 : i32
    %44 = vector.broadcast %c16_i32_5 : i32 to vector<8x128xi32>
    %45 = arith.shrui %43, %44 : vector<8x128xi32>
    %46 = arith.xori %43, %45 : vector<8x128xi32>
    %c9_i32_6 = arith.constant 9 : i32
    %47 = vector.broadcast %c9_i32_6 : i32 to vector<8x128xi32>
    %48 = arith.shrui %46, %47 : vector<8x128xi32>
    %c1065353216_i32_7 = arith.constant 1065353216 : i32
    %49 = vector.broadcast %c1065353216_i32_7 : i32 to vector<8x128xi32>
    %50 = arith.ori %48, %49 : vector<8x128xi32>
    %51 = tpu.bitcast %50 : vector<8x128xi32> -> vector<8x128xf32>
    %cst_8 = arith.constant 1.000000e+00 : f32
    %52 = vector.broadcast %cst_8 : f32 to vector<8x128xf32>
    %53 = arith.subf %51, %52 : vector<8x128xf32>
    %cst_9 = arith.constant 1.000000e+00 : f32
    %54 = vector.broadcast %cst_9 : f32 to vector<8x128xf32>
    %55 = arith.subf %54, %30 : vector<8x128xf32>
    %56 = math.log %55 : vector<8x128xf32>
    %cst_10 = arith.constant -2.000000e+00 : f32
    %57 = vector.broadcast %cst_10 : f32 to vector<8x128xf32>
    %58 = arith.mulf %57, %56 : vector<8x128xf32>
    %59 = math.sqrt %58 : vector<8x128xf32>
    %cst_11 = arith.constant 6.28318548 : f32
    %60 = vector.broadcast %cst_11 : f32 to vector<8x128xf32>
    %61 = arith.mulf %60, %53 : vector<8x128xf32>
    %62 = math.cos %61 : vector<8x128xf32>
    %63 = arith.mulf %59, %62 : vector<8x128xf32>
    %c0_12 = arith.constant 0 : index
    %c0_13 = arith.constant 0 : index
    %64 = vector.load %arg2[%c0_12, %c0_13] : memref<8x256xf32, #tpu.memory_space<vmem>>, vector<8x128xf32>
    tpu.vector_store %arg2[%c0_12, %c0_13], %63 {strides = array<i32>} : memref<8x256xf32, #tpu.memory_space<vmem>>, vector<8x128xf32>,
    %65 = math.sin %61 : vector<8x128xf32>
    %66 = arith.mulf %59, %65 : vector<8x128xf32>
    %c0_14 = arith.constant 0 : index
    %c128 = arith.constant 128 : index
    %67 = vector.load %arg2[%c0_14, %c128] : memref<8x256xf32, #tpu.memory_space<vmem>>, vector<8x128xf32>
    tpu.vector_store %arg2[%c0_14, %c128], %66 {strides = array<i32>} : memref<8x256xf32, #tpu.memory_space<vmem>>, vector<8x128xf32>,
    return
  }
  func.func @transform_0(%arg0: i32) -> i32 {
    %c0_i32 = arith.constant 0 : i32
    %c0_i32_0 = arith.constant 0 : i32
    return %c0_i32 : i32
  }
  func.func @transform_1(%arg0: i32) -> (i32, i32) {
    %c0_i32 = arith.constant 0 : i32
    %c0_i32_0 = arith.constant 0 : i32
    return %arg0, %c0_i32 : i32, i32
  }
}

</mosaic_0001>

<bundles_post_ra>
// kernel: tpu_custom_call.1
= control target key start
LH: loop header
LB: loop body
LE: loop exit
PB: predicated region body
PF: predicated region fallthrough
CT: control target
= control target key end

     0   :  { %7 = vsyncpa [#allocation4], 0  ;;  %v12_v0 = vlaneseq  ;;  %v441_v38 = vmov 683565275   ;;  %v442_v40 = vmov 2475754826   ;;  %s523_s0 = inlined_call_operand.<no memory space> [shape: s32[1], index: 0, kind: input, shape index: {}]   ;;  %s524_s1 = inlined_call_operand.hbm [shape: f32[8,256], index: 1, kind: output, shape index: {}]  }
   0x1   :  { %s34_s8 = sxor.u32 2654435769, %s523_s0  ;;  %v20_v11 = vstv %s523_s0  ;;  %v443_v42 = vmov 2131351028   ;;  %v444_v44 = vmov 2102212464  }
   0x2   :  { %v13_v1 = vshrl.u32 %v12_v0, 7  ;;  %v17_v2 = vand.u32 127, %v12_v0  ;;  %v35_v4 = vstv %s34_s8  ;;  %v445_v46 = vmov 920167782   ;;  %s448_s0 = smov [#allocation3]   ;;  %s386_s14 = sshll.u32 %s524_s1, 4  ;;  %s387_s14 = int_to_ptr.hbm [resolvable:$true] %s386_s14 }
   0x3   :  { %v446_v53 = vmov 1326507024   ;;  %s384_s11 = sshll.u32 %s448_s0, 4  ;;  %s385_s11 = int_to_ptr.vmem [resolvable:$true] %s384_s11 }
   0x4   :  { %v18_v3 = vmul.u32 128, %v13_v1 }
   0x6   :  { %v19_v5 = vadd.s32 %v18_v3, %v17_v2 }
   0x8   :  { %v36_v6 = vxor.u32 %v35_v4, %v19_v5  ;;  %v21_v13 = vxor.u32 %v20_v11, %v19_v5 }
   0xa   :  { %v37_v7 = vshrl.u32 %v36_v6, 16  ;;  %v22_v16 = vshrl.u32 %v21_v13, 16 }
   0xc   :  { %v38_v8 = vxor.u32 %v37_v7, %v36_v6  ;;  %v23_v19 = vxor.u32 %v22_v16, %v21_v13 }
   0xe   :  { %v39_v9 = vmul.u32 2146121005, %v38_v8  ;;  %v24_v22 = vmul.u32 2146121005, %v23_v19 }
  0x10   :  { %v40_v10 = vshrl.u32 %v39_v9, 15  ;;  %v25_v25 = vshrl.u32 %v24_v22, 15 }
  0x12   :  { %v41_v12 = vxor.u32 %v40_v10, %v39_v9  ;;  %v26_v29 = vxor.u32 %v25_v25, %v24_v22 }
  0x14   :  { %v42_v14 = vmul.u32 2221713035, %v41_v12  ;;  %v27_v33 = vmul.u32 2221713035, %v26_v29 }
  0x16   :  { %v43_v15 = vshrl.u32 %v42_v14, 16  ;;  %v28_v48 = vshrl.u32 %v27_v33, 16 }
  0x18   :  { %v44_v17 = vxor.u32 %v43_v15, %v42_v14  ;;  %v29_v62 = vxor.u32 %v28_v48, %v27_v33 }
  0x1a   :  { %v45_v18 = vshrl.u32 %v44_v17, 9  ;;  %v30_v11 = vshrl.u32 %v29_v62, 9 }
  0x1c   :  { %v46_v20 = vor.u32 1065353216, %v45_v18 }
  0x1e   :  { %v396_v21 = vadd.f32 -1.0, %v46_v20 }
  0x20   :  { %v465_v23 = vmul.f32 6.2831855, %v396_v21 }
  0x22   :  { %v69_v24 = vand.u32 2139095040, %v465_v23  ;;  %v66_v27 = vand.u32 2147483647, %v465_v23  ;;  %vm68_vm12 = vcmp.lt.s32.totalorder %v465_v23, 0 }
  0x24   :  { %v70_v26 = vshrl.u32 %v69_v24, 23  ;;  %v73_v31 = vand.u32 8388607, %v66_v27  ;;  %v31_v24 = vor.u32 1065353216, %v30_v11  ;;  %vm67_vm13 = vcmp.le.f32.partialorder %v66_v27, 0.7853982 }
  0x26   :  { %v397_v28 = vadd.s32 4294967169, %v70_v26  ;;  %v74_v35 = vor.u32 8388608, %v73_v31  ;;  %v395_v48 = vadd.f32 -1.0, %v31_v24 }
  0x28   :  { %v76_v30 = vadd.s32 1, %v397_v28  ;;  %v474_v55 = vshll.u32 %v74_v35, 8 }
  0x2a   :  { %vm77_vm0 = vcmp.gt.s32.totalorder %v76_v30, 0  ;;  %v115_v4 = vand.u32 65535, %v474_v55  ;;  %v116_v5 = vshrl.u32 %v474_v55, 16 }
  0x2b   :  { %v78_v32 = vsel %vm77_vm0, %v76_v30, 0 }
  0x2c   :  { %v80_v34 = vand.u32 31, %v78_v32  ;;  %v471_v36 = vshrl.u32 %v78_v32, 5  ;;  %v447_v32 = vmov 0  }
  0x2e   :  { %v81_v37 = vsub.s32 32, %v80_v34  ;;  %v83_v39 = vshll.u32 %v441_v38, %v80_v34  ;;  %v86_v41 = vshll.u32 %v442_v40, %v80_v34  ;;  %v89_v43 = vshll.u32 %v443_v42, %v80_v34 }
  0x2f   :  { %v92_v45 = vshll.u32 %v444_v44, %v80_v34  ;;  %v95_v47 = vshll.u32 %v445_v46, %v80_v34  ;;  %vm98_vm1 = vcmp.lt.s32.totalorder %v471_v36, 1  ;;  %vm101_vm2 = vcmp.lt.s32.totalorder %v471_v36, 4 }
  0x30   :  { %v84_v49 = vshrl.u32 %v442_v40, %v81_v37  ;;  %v87_v50 = vshrl.u32 %v443_v42, %v81_v37  ;;  %v90_v51 = vshrl.u32 %v444_v44, %v81_v37  ;;  %v93_v52 = vshrl.u32 %v445_v46, %v81_v37 }
  0x31   :  { %v96_v54 = vshrl.u32 %v446_v53, %v81_v37  ;;  %vm100_vm3 = vcmp.lt.s32.totalorder %v471_v36, 3  ;;  %vm99_vm4 = vcmp.lt.s32.totalorder %v471_v36, 2  ;;  %v82_v13 = vshrl.u32 %v441_v38, %v81_v37 }
  0x32   :  { %v85_v56 = vor.u32 %v84_v49, %v83_v39  ;;  %v88_v57 = vor.u32 %v87_v50, %v86_v41  ;;  %v91_v58 = vor.u32 %v90_v51, %v89_v43  ;;  %v94_v59 = vor.u32 %v93_v52, %v92_v45 }
  0x33   :  { %v97_v60 = vor.u32 %v96_v54, %v95_v47 }
  0x34   :  { %v106_v61 = vsel %vm98_vm1, %v85_v56, %v88_v57  ;;  %v107_v63 = vsel %vm101_vm2, %v94_v59, 920167782  ;;  %v110_v0 = vsel %vm98_vm1, %v88_v57, %v91_v58  ;;  %v102_v28 = vsel %vm98_vm1, %v82_v13, %v85_v56 }
  0x35   :  { %v111_v1 = vsel %vm101_vm2, %v97_v60, 1326507024  ;;  %v108_v2 = vsel %vm100_vm3, %v91_v58, %v107_v63  ;;  %v103_v31 = vsel %vm101_vm2, %v91_v58, 2102212464  ;;  %v49_v56 = vsub.f32 1.0, %v395_v48 }
  0x36   :  { %v112_v3 = vsel %vm100_vm3, %v94_v59, %v111_v1  ;;  %v109_v6 = vsel %vm99_vm4, %v106_v61, %v108_v2  ;;  %v104_v42 = vsel %vm100_vm3, %v88_v57, %v103_v31 }
  0x37   :  { %v113_v7 = vsel %vm99_vm4, %v110_v0, %v112_v3  ;;  %v139_v10 = vand.u32 65535, %v109_v6  ;;  %v140_v12 = vshrl.u32 %v109_v6, 16  ;;  %v105_v51 = vsel %vm99_vm4, %v102_v28, %v104_v42 }
  0x38   :  { %v117_v8 = vand.u32 65535, %v113_v7  ;;  %v118_v9 = vshrl.u32 %v113_v7, 16  ;;  %v159_v58 = vmul.u32 %v474_v55, %v105_v51  ;;  %411 = vlog2.f32 %v49_v56 }
  0x39   :  { %v141_v17 = vmul.u32 %v139_v10, %v115_v4  ;;  %v142_v18 = vmul.u32 %v140_v12, %v115_v4  ;;  %v143_v19 = vmul.u32 %v139_v10, %v116_v5  ;;  %v144_v25 = vmul.u32 %v140_v12, %v116_v5 }
  0x3a   :  { %v119_v14 = vmul.u32 %v117_v8, %v115_v4  ;;  %v120_v15 = vmul.u32 %v118_v9, %v115_v4  ;;  %v121_v16 = vmul.u32 %v117_v8, %v116_v5  ;;  %v122_v20 = vmul.u32 %v118_v9, %v116_v5 }
  0x3b   :  { %v145_v26 = vshll.u32 %v142_v18, 16  ;;  %v147_v30 = vshll.u32 %v143_v19, 16  ;;  %v146_v40 = vshrl.u32 %v142_v18, 16  ;;  %v148_v46 = vshrl.u32 %v143_v19, 16 }
  0x3c   :  { %v123_v21 = vshll.u32 %v120_v15, 16  ;;  %v125_v22 = vshll.u32 %v121_v16, 16  ;;  %v124_v35 = vshrl.u32 %v120_v15, 16  ;;  %v126_v43 = vshrl.u32 %v121_v16, 16 }
  0x3d   :  { %vm149_vm6 = vc.u32 %v141_v17, %v145_v26  ;;  %v151_v34 = vadd.s32 %v145_v26, %v141_v17 }
  0x3e   :  { %vm127_vm5 = vc.u32 %v119_v14, %v123_v21  ;;  %v129_v29 = vadd.s32 %v123_v21, %v119_v14  ;;  %v150_v38 = vsel %vm149_vm6, 1, %v447_v32  ;;  %v412_v63 = vpop.eup %411  ;;  %vm209_vm6 = vweird.f32 %v465_v23 }
  0x3f   :  { %v128_v33 = vsel %vm127_vm5, 1, %v447_v32  ;;  %v152_v41 = vadd.s32 %v150_v38, %v144_v25  ;;  %vm153_vm8 = vc.u32 %v151_v34, %v147_v30  ;;  %v155_v50 = vadd.s32 %v151_v34, %v147_v30 }
  0x40   :  { %v130_v37 = vadd.s32 %v128_v33, %v122_v20  ;;  %vm131_vm7 = vc.u32 %v129_v29, %v125_v22  ;;  %v154_v45 = vsel %vm153_vm8, 1, %v447_v32  ;;  %v51_v2 = vmul.f32 0.6931472, %v412_v63 }
  0x41   :  { %v132_v39 = vsel %vm131_vm7, 1, %v447_v32  ;;  %v156_v47 = vadd.s32 %v154_v45, %v152_v41 }
  0x42   :  { %v134_v44 = vadd.s32 %v132_v39, %v130_v37  ;;  %v506_v4 = vmul.f32 -2.0, %v51_v2 }
  0x43   :  { %v157_v52 = vadd.s32 %v156_v47, %v146_v40 }
  0x44   :  { %v135_v49 = vadd.s32 %v134_v44, %v124_v35  ;;  %413 = vrsqrt.f32 %v506_v4  ;;  %vm60_vm14 = vcmp.eq.f32.partialorder %v506_v4, inf  ;;  %vm62_vm1 = vcmp.eq.f32.partialorder %v506_v4, 0.0 }
  0x45   :  { %v158_v54 = vadd.s32 %v157_v52, %v148_v46 }
  0x46   :  { %v136_v53 = vadd.s32 %v135_v49, %v126_v43 }
  0x47   :  { %v162_v59 = vadd.s32 1, %v158_v54 }
  0x48   :  { %vm161_vm9 = vc.u32 %v136_v53, %v155_v50  ;;  %v160_v55 = vadd.s32 %v155_v50, %v136_v53  ;;  %v63_v50 = vand.u32 2147483648, %v506_v4 }
  0x49   :  { %v163_v57 = vsel %vm161_vm9, %v162_v59, %v158_v54 }
  0x4a   :  { %v164_v60 = vadd.s32 %v163_v57, %v159_v58  ;;  %v414_v13 = vpop.eup %413 }
  0x4b   :  { %v54_v18 = vmul.f32 %v414_v13, %v506_v4 }
  0x4c   :  { %v165_v61 = vadd.s32 536870912, %v164_v60 }
  0x4d   :  { %v55_v21 = vmul.f32 %v414_v13, %v54_v18 }
  0x4e   :  { %v166_v62 = vshrl.u32 %v165_v61, 30 }
  0x4f   :  { %v56_v26 = vmul.f32 0.5, %v55_v21 }
  0x50   :  { %v167_v0 = vshll.u32 %v166_v62, 30  ;;  %v190_v22 = vsub.s32 4, %v166_v62 }
  0x51   :  { %v57_v34 = vsub.f32 1.5, %v56_v26 }
  0x52   :  { %v168_v1 = vsub.s32 %v164_v60, %v167_v0  ;;  %v191_v28 = vsel %vm68_vm12, %v190_v22, %v166_v62 }
  0x53   :  { %v193_v31 = vsel %vm67_vm13, 0, %v191_v28  ;;  %v58_v41 = vmul.f32 %v414_v13, %v57_v34 }
  0x54   :  { %vm169_vm10 = vcmp.lt.s32.totalorder %v168_v1, 0  ;;  %v170_v36 = vsub.s32 0, %v168_v1  ;;  %v366_v38 = vadd.s32 3, %v193_v31  ;;  %v210_v27 = vand.u32 3, %v193_v31 }
  0x55   :  { %v59_v47 = vmul.f32 %v58_v41, %v506_v4 }
  0x56   :  { %v171_v3 = vsel %vm169_vm10, %v170_v36, %v168_v1  ;;  %v367_v44 = vand.u32 3, %v366_v38  ;;  %vm215_vm15 = vcmp.eq.s32.totalorder %v210_v27, 2  ;;  %vm211_vm2 = vcmp.lt.s32.totalorder %v210_v27, 2 }
  0x57   :  { %v172_v5 = vclz %v171_v3  ;;  %v61_v53 = vsel %vm60_vm14, %v506_v4, %v59_v47  ;;  %vm212_vm3 = vcmp.eq.s32.totalorder %v210_v27, 0 }
  0x58   :  { %vm372_vm0 = vcmp.eq.s32.totalorder %v367_v44, 2  ;;  %vm369_vm4 = vcmp.eq.s32.totalorder %v367_v44, 0  ;;  %vm368_vm5 = vcmp.lt.s32.totalorder %v367_v44, 2  ;;  %v64_v59 = vsel %vm62_vm1, %v63_v50, %v61_v53 }
  0x59   :  { %v398_v6 = vadd.s32 4294967294, %v172_v5 }
  0x5b   :  { %vm399_vm11 = vcmp.lt.s32.totalorder %v398_v6, 0 }
  0x5c   :  { %v175_v7 = vsel %vm399_vm11, 0, %v398_v6 }
  0x5d   :  { %v176_v8 = vsub.s32 32, %v175_v7  ;;  %v177_v9 = vshll.u32 %v168_v1, %v175_v7  ;;  %v180_v10 = vsub.s32 4294967266, %v175_v7 }
  0x5f   :  { %v178_v11 = vshrl.u32 %v160_v55, %v176_v8  ;;  %v181_v12 = vadd.s32 127, %v180_v10 }
  0x61   :  { %v179_v14 = vor.u32 %v178_v11, %v177_v9  ;;  %v182_v15 = vshll.u32 %v181_v12, 23 }
  0x63   :  { %v183_v16 = vor.u32 4788187, %v182_v15  ;;  %v186_v17 = vcvt.s32.f32 %v179_v14 }
  0x65   :  { %v184_v19 = vand.u32 2147483647, %v183_v16 }
  0x67   :  { %v187_v20 = vmul.f32 %v186_v17, %v184_v19 }
  0x69   :  { %v188_v24 = vxor.u32 2147483648, %v187_v20 }
  0x6b   :  { %v189_v25 = vsel %vm68_vm12, %v188_v24, %v187_v20 }
  0x6c   :  { %v192_v29 = vsel %vm67_vm13, %v465_v23, %v189_v25 }
  0x6d   :  { %v194_v30 = vmul.f32 %v192_v29, %v192_v29 }
  0x6f   :  { %v195_v32 = vmul.f32 -0.001358992, %v194_v30  ;;  %v202_v33 = vmul.f32 -0.00019511016, %v194_v30 }
  0x71   :  { %v196_v35 = vadd.f32 0.041655596, %v195_v32  ;;  %v203_v37 = vadd.f32 0.008332121, %v202_v33 }
  0x73   :  { %v197_v39 = vmul.f32 %v196_v35, %v194_v30  ;;  %v204_v40 = vmul.f32 %v203_v37, %v194_v30 }
  0x75   :  { %v198_v42 = vadd.f32 -0.4999988, %v197_v39  ;;  %v205_v43 = vadd.f32 -0.16666654, %v204_v40 }
  0x77   :  { %v199_v45 = vmul.f32 %v198_v42, %v194_v30  ;;  %v206_v46 = vmul.f32 %v205_v43, %v194_v30 }
  0x79   :  { %v200_v48 = vadd.f32 1.0, %v199_v45  ;;  %v207_v49 = vadd.f32 1.0, %v206_v46 }
  0x7b   :  { %v208_v51 = vmul.f32 %v207_v49, %v192_v29  ;;  %v216_v52 = vxor.u32 2147483648, %v200_v48 }
  0x7d   :  { %v213_v54 = vxor.u32 2147483648, %v208_v51  ;;  %v217_v56 = vsel %vm215_vm15, %v216_v52, %v208_v51  ;;  %v374_v58 = vsel %vm372_vm0, %v216_v52, %v208_v51 }
  0x7f   :  { %v214_v57 = vsel %vm212_vm3, %v200_v48, %v213_v54  ;;  %v371_v60 = vsel %vm369_vm4, %v200_v48, %v213_v54 }
  0x80   :  { %v218_v61 = vsel %vm211_vm2, %v214_v57, %v217_v56  ;;  %v375_v62 = vsel %vm368_vm5, %v371_v60, %v374_v58 }
  0x81   :  { %v219_v63 = vsel %vm209_vm6, nan, %v218_v61  ;;  %v376_v0 = vsel %vm209_vm6, nan, %v375_v62 }
  0x82   :  { %v220_v1 = vmul.f32 %v219_v63, %v64_v59  ;;  %v377_v2 = vmul.f32 %v376_v0, %v64_v59 }
  0x84   :  { %221 = vst [vmem:[#allocation3] sm:$0xff] %v220_v1 }
  0x85   :  { %378 = vst [vmem:[#allocation3 + $0x8] sm:$0xff] %v377_v2 }
  0x86   :  { %389 = dma.vmem_to_hbm [thread:$0]  %s385_s11, 256, %s387_s14, [#allocation4]  }
  0x87   :  { %439 = dma.done.wait [#allocation4], 256  }
  0x88   :  { %440 = vsyncadd [#allocation4], 4294967040 }
  0x89   :  { %394 = vsyncpa [#allocation4], 1 }

</bundles_post_ra>
